<compile_context>
chip_gen: v7x
topology: tpu7x:2x2x1
jax: 0.10.0
libtpu: 0.0.40
codegen_flags: <defaults>
</compile_context>

<pallas_src>
import functools
import math

import jax
import jax.numpy as jnp
from jax.experimental import pallas as pl
from jax.experimental.pallas import tpu as pltpu


_CP = 128               # lane-padded Cout of conv1
_K1, _S1, _P1 = 5, 2, 2  # conv1 kernel / stride / pad
_S2, _P2 = 2, 2          # conv2 (1x1) stride / pad


def _conv_out(n, k, s, p):
    return (n + 2 * p - k) // s + 1


# ----------------------------- Pallas kernel ------------------------------ #
def _fused_model_kernel(lhs_ref, w1_ref, b1s_ref, w2r_ref, sr_ref, sc_ref,
                        b2a_ref, o_ref, *, oh1, ow1, oh2, ow2):
    # conv1 as a single deep-K bf16 MXU matmul with f32 accumulation.
    acc = jnp.dot(lhs_ref[...], w1_ref[...],
                  preferred_element_type=jnp.float32)          # (m1, 128) f32

    # epilogue 1: (b1 - 0.5) folded into one row add, relu.
    v3 = jnp.maximum(acc + b1s_ref[...], 0.0)                  # (m1, 128) f32

    # conv2 (1x1, Cout=1): channel-weight the lanes, cross-lane reduce.
    s = jnp.sum((v3 * w2r_ref[...]).reshape(oh1, ow1, _CP), axis=2)  # (oh1, ow1)

    # stride-2 / pad-2 spatial sampling via host-precomputed 0/1 selectors;
    # all-zero selector rows/cols reproduce the zero padding exactly.
    t = jnp.dot(sr_ref[...],
                jnp.dot(s, sc_ref[...], preferred_element_type=jnp.float32),
                preferred_element_type=jnp.float32)            # (oh2, ow2)

    out = jnp.maximum(t + b2a_ref[0, 0], 0.0)                  # + (b2-1.5), relu
    o_ref[...] = out.reshape(1, oh2, ow2).astype(o_ref.dtype)


# --------------------- one-time parameter preprocessing -------------------- #
def prepare_params(w1, b1, w2, b2, h, w):
    cout1, cin = w1.shape[0], w1.shape[1]
    oh1, ow1 = _conv_out(h, _K1, _S1, _P1), _conv_out(w, _K1, _S1, _P1)
    oh2, ow2 = _conv_out(oh1, 1, _S2, _P2), _conv_out(ow1, 1, _S2, _P2)
    k_raw = _K1 * _K1 * cin
    kp = ((k_raw + 255) // 256) * 256   # pad contraction to MXU-friendly depth

    # conv1 weights: (Cout,Cin,5,5) -> (KH,KW,Cin,Cout) -> (K, 128) bf16,
    # tap-major rows (matching the im2col LHS ordering), K and Cout zero-padded.
    w1m = jnp.transpose(w1, (2, 3, 1, 0)).reshape(k_raw, cout1)
    w1m = jnp.pad(w1m, ((0, kp - k_raw), (0, _CP - cout1))).astype(jnp.bfloat16)
    b1s = jnp.pad(b1 - 0.5, (0, _CP - cout1)).reshape(1, _CP).astype(jnp.float32)

    # conv2 (1x1, Cout=1): channel-weight row + adjusted scalar bias.
    w2r = jnp.pad(w2[0, :, 0, 0], (0, _CP - cout1)).reshape(1, _CP).astype(jnp.float32)
    b2a = (b2.reshape(1, 1) - 1.5).astype(jnp.float32)

    # stride-2 / pad-2 spatial samplers (exact 0/1 f32 matrices).
    a = jnp.arange(oh2)[:, None]
    sel_rows = (jnp.arange(oh1)[None, :] == _S2 * a - _P2).astype(jnp.float32)
    b = jnp.arange(ow2)[None, :]
    sel_cols = (jnp.arange(ow1)[:, None] == _S2 * b - _P2).astype(jnp.float32)

    dims = dict(oh1=int(oh1), ow1=int(ow1), oh2=int(oh2), ow2=int(ow2), kp=int(kp))
    return (w1m, b1s, w2r, sel_rows, sel_cols, b2a), dims


# ------------------------------- forward ----------------------------------- #
def make_forward(dims):
    oh1, ow1, oh2, ow2, kp = (dims["oh1"], dims["ow1"], dims["oh2"],
                              dims["ow2"], dims["kp"])
    m1 = oh1 * ow1
    kernel = functools.partial(_fused_model_kernel,
                               oh1=oh1, ow1=ow1, oh2=oh2, ow2=ow2)

    @jax.jit
    def forward(x, w1m, b1s, w2r, sel_rows, sel_cols, b2a):
        n, cin, h, w = x.shape
        assert n == 1, "reference model squeezes batch dim 0 (must be 1)"
        k_raw = _K1 * _K1 * cin

        # Host-side im2col: cast to bf16 early, pad spatially, gather the 25
        # stride-2 taps into a single (m1, K) LHS (tap-major, channel-minor).
        x_hwc = jnp.transpose(x[0], (1, 2, 0)).astype(jnp.bfloat16)   # (H,W,C)
        xpad = jnp.pad(x_hwc, ((_P1, _P1), (_P1, _P1), (0, 0)))
        taps = [xpad[ky:ky + _S1 * oh1 - 1:_S1, kx:kx + _S1 * ow1 - 1:_S1, :]
                for ky in range(_K1) for kx in range(_K1)]
        lhs = jnp.stack(taps, axis=2).reshape(m1, k_raw)
        lhs = jnp.pad(lhs, ((0, 0), (0, kp - k_raw)))                 # (m1, kp) bf16

        return pl.pallas_call(
            kernel,
            out_shape=jax.ShapeDtypeStruct((1, oh2, ow2), jnp.float32),
            grid=(1,),
            in_specs=[
                pl.BlockSpec((m1, kp), lambda i: (0, 0)),
                pl.BlockSpec((kp, _CP), lambda i: (0, 0)),
                pl.BlockSpec((1, _CP), lambda i: (0, 0)),
                pl.BlockSpec((1, _CP), lambda i: (0, 0)),
                pl.BlockSpec((oh2, oh1), lambda i: (0, 0)),
                pl.BlockSpec((ow1, ow2), lambda i: (0, 0)),
                pl.BlockSpec(memory_space=pltpu.MemorySpace.SMEM),  # scalar b2-1.5
            ],
            out_specs=pl.BlockSpec((1, oh2, ow2), lambda i: (0, 0, 0)),
            compiler_params=pltpu.CompilerParams(
                dimension_semantics=("arbitrary",)),
        )(lhs, w1m, b1s, w2r, sel_rows, sel_cols, b2a)

    return forward


# ----------------------------- pure-JAX reference -------------------------- #
def _ref_forward(x, w1, b1, w2, b2):
    dn = ("NCHW", "OIHW", "NCHW")
    y = jax.lax.conv_general_dilated(x, w1, (2, 2), [(2, 2), (2, 2)],
                                     dimension_numbers=dn,
                                     precision=jax.lax.Precision.HIGHEST)
    y = y + b1[None, :, None, None]
    y = jnp.maximum(y - 0.5, 0.0)
    y = jax.lax.conv_general_dilated(y, w2, (2, 2), [(2, 2), (2, 2)],
                                     dimension_numbers=dn,
                                     precision=jax.lax.Precision.HIGHEST)
    y = y + b2[None, :, None, None]
    y = jnp.maximum(y - 1.5, 0.0)
    return y[0]


if __name__ == "__main__":
    key = jax.random.PRNGKey(0)
    k1, k2, k3, k4, k5 = jax.random.split(key, 5)

    # Small shapes consistent with the module: N=1, Cin=64, 16x16 spatial.
    H = W = 16
    # Scale the input so the "- 1.5 then relu" path produces some nonzero outputs.
    x = 8.0 * jax.random.normal(k1, (1, 64, H, W), dtype=jnp.float32)

    # Deterministic PyTorch-style uniform init.
    fan1 = 64 * 5 * 5
    w1 = jax.random.uniform(k2, (32, 64, 5, 5), jnp.float32, -1.0, 1.0) / math.sqrt(fan1)
    b1 = jax.random.uniform(k3, (32,), jnp.float32, -1.0, 1.0) / math.sqrt(fan1)
    fan2 = 32
    w2 = jax.random.uniform(k4, (1, 32, 1, 1), jnp.float32, -1.0, 1.0) / math.sqrt(fan2)
    b2 = jax.random.uniform(k5, (1,), jnp.float32, -1.0, 1.0) / math.sqrt(fan2)

    # Weight-side packing done ONCE (hoisted out of the per-call path).
    params, dims = prepare_params(w1, b1, w2, b2, H, W)
    forward = make_forward(dims)

    out = forward(x, *params)
    out = jax.block_until_ready(out)

    # Loose check vs the true f32 reference (kernel uses bf16 MXU operands).
    ref = _ref_forward(x, w1, b1, w2, b2)
    assert out.shape == ref.shape, (out.shape, ref.shape)
    assert jnp.allclose(out, ref, atol=1.5e-1, rtol=5e-2), \
        float(jnp.max(jnp.abs(out - ref)))

    # Tight check vs a reference whose conv1 operands are also rounded to bf16.
    ref_b = _ref_forward(x.astype(jnp.bfloat16).astype(jnp.float32),
                         w1.astype(jnp.bfloat16).astype(jnp.float32), b1, w2, b2)
    assert jnp.allclose(out, ref_b, atol=2e-3, rtol=2e-3), \
        float(jnp.max(jnp.abs(out - ref_b)))

    print("KERNEL_OK")
</pallas_src>

<mosaic_0001>
module attributes {stable_mosaic.version = 11 : i64} {
  func.func @_fused_model_kernel(%arg0: i32, %arg1: memref<64x1792xbf16, #tpu.memory_space<vmem>>, %arg2: memref<1792x128xbf16, #tpu.memory_space<vmem>>, %arg3: memref<1x128xf32, #tpu.memory_space<vmem>>, %arg4: memref<1x128xf32, #tpu.memory_space<vmem>>, %arg5: memref<6x8xf32, #tpu.memory_space<vmem>>, %arg6: memref<8x6xf32, #tpu.memory_space<vmem>>, %arg7: memref<1x1xf32, #tpu.memory_space<smem>>, %arg8: memref<1x6x6xf32, #tpu.memory_space<vmem>>) attributes {dimension_semantics = [#tpu.dimension_semantics<arbitrary>], iteration_bounds = array<i64: 1>, scalar_prefetch = 0 : i64, scratch_operands = 0 : i64, tpu.core_type = #tpu.core_type<tc>, window_params = [{pipeline_mode = #tpu.pipeline_mode<synchronous>, transform_indices = @transform_0, window_bounds = array<i64: 64, 1792>}, {pipeline_mode = #tpu.pipeline_mode<synchronous>, transform_indices = @transform_1, window_bounds = array<i64: 1792, 128>}, {pipeline_mode = #tpu.pipeline_mode<synchronous>, transform_indices = @transform_2, window_bounds = array<i64: 1, 128>}, {pipeline_mode = #tpu.pipeline_mode<synchronous>, transform_indices = @transform_3, window_bounds = array<i64: 1, 128>}, {pipeline_mode = #tpu.pipeline_mode<synchronous>, transform_indices = @transform_4, window_bounds = array<i64: 6, 8>}, {pipeline_mode = #tpu.pipeline_mode<synchronous>, transform_indices = @transform_5, window_bounds = array<i64: 8, 6>}, {transform_indices = @transform_6, window_bounds = array<i64: 1, 1>}, {pipeline_mode = #tpu.pipeline_mode<synchronous>, transform_indices = @transform_7, window_bounds = array<i64: 1, 6, 6>}]} {
    %c0 = arith.constant 0 : index
    %c0_0 = arith.constant 0 : index
    %0 = vector.load %arg1[%c0, %c0_0] : memref<64x1792xbf16, #tpu.memory_space<vmem>>, vector<64x1792xbf16>
    %c0_1 = arith.constant 0 : index
    %c0_2 = arith.constant 0 : index
    %1 = vector.load %arg2[%c0_1, %c0_2] : memref<1792x128xbf16, #tpu.memory_space<vmem>>, vector<1792x128xbf16>
    %cst = arith.constant dense<0.000000e+00> : vector<64x128xf32>
    %2 = tpu.matmul %0, %1, %cst {dimension_numbers = #tpu.dot_dimension_numbers<[1], [0], [0], [1], [0, 0, 1, 1], [], []>} : vector<64x1792xbf16>, vector<1792x128xbf16>, vector<64x128xf32> -> vector<64x128xf32>
    %c0_3 = arith.constant 0 : index
    %c0_4 = arith.constant 0 : index
    %3 = vector.load %arg3[%c0_3, %c0_4] : memref<1x128xf32, #tpu.memory_space<vmem>>, vector<1x128xf32>
    %4 = vector.broadcast %3 : vector<1x128xf32> to vector<64x128xf32>
    %5 = arith.addf %2, %4 : vector<64x128xf32>
    %cst_5 = arith.constant 0.000000e+00 : f32
    %6 = vector.broadcast %cst_5 : f32 to vector<64x128xf32>
    %7 = arith.maximumf %5, %6 : vector<64x128xf32>
    %c0_6 = arith.constant 0 : index
    %c0_7 = arith.constant 0 : index
    %8 = vector.load %arg4[%c0_6, %c0_7] : memref<1x128xf32, #tpu.memory_space<vmem>>, vector<1x128xf32>
    %9 = vector.broadcast %8 : vector<1x128xf32> to vector<64x128xf32>
    %10 = arith.mulf %7, %9 : vector<64x128xf32>
    %11 = vector.shape_cast %10 : vector<64x128xf32> to vector<8x8x128xf32>
    %cst_8 = arith.constant dense<0.000000e+00> : vector<8x8xf32>
    %12 = vector.multi_reduction <add>, %11, %cst_8 [2] : vector<8x8x128xf32> to vector<8x8xf32>
    %c0_9 = arith.constant 0 : index
    %c0_10 = arith.constant 0 : index
    %13 = vector.load %arg5[%c0_9, %c0_10] : memref<6x8xf32, #tpu.memory_space<vmem>>, vector<6x8xf32>
    %c0_11 = arith.constant 0 : index
    %c0_12 = arith.constant 0 : index
    %14 = vector.load %arg6[%c0_11, %c0_12] : memref<8x6xf32, #tpu.memory_space<vmem>>, vector<8x6xf32>
    %cst_13 = arith.constant dense<0.000000e+00> : vector<8x6xf32>
    %15 = tpu.matmul %12, %14, %cst_13 {dimension_numbers = #tpu.dot_dimension_numbers<[1], [0], [0], [1], [0, 0, 1, 1], [], []>} : vector<8x8xf32>, vector<8x6xf32>, vector<8x6xf32> -> vector<8x6xf32>
    %cst_14 = arith.constant dense<0.000000e+00> : vector<6x6xf32>
    %16 = tpu.matmul %13, %15, %cst_14 {dimension_numbers = #tpu.dot_dimension_numbers<[1], [0], [0], [1], [0, 0, 1, 1], [], []>} : vector<6x8xf32>, vector<8x6xf32>, vector<6x6xf32> -> vector<6x6xf32>
    %c0_15 = arith.constant 0 : index
    %c0_16 = arith.constant 0 : index
    %17 = memref.load %arg7[%c0_15, %c0_16] : memref<1x1xf32, #tpu.memory_space<smem>>
    %18 = vector.broadcast %17 : f32 to vector<6x6xf32>
    %19 = arith.addf %16, %18 : vector<6x6xf32>
    %cst_17 = arith.constant 0.000000e+00 : f32
    %20 = vector.broadcast %cst_17 : f32 to vector<6x6xf32>
    %21 = arith.maximumf %19, %20 : vector<6x6xf32>
    %22 = vector.shape_cast %21 : vector<6x6xf32> to vector<1x6x6xf32>
    %c0_18 = arith.constant 0 : index
    %c0_19 = arith.constant 0 : index
    %c0_20 = arith.constant 0 : index
    %23 = vector.load %arg8[%c0_18, %c0_19, %c0_20] : memref<1x6x6xf32, #tpu.memory_space<vmem>>, vector<1x6x6xf32>
    tpu.vector_store %arg8[%c0_18, %c0_19, %c0_20], %22 {strides = array<i32>} : memref<1x6x6xf32, #tpu.memory_space<vmem>>, vector<1x6x6xf32>,
    return
  }
  func.func @transform_0(%arg0: i32) -> (i32, i32) {
    %c0_i32 = arith.constant 0 : i32
    %c0_i32_0 = arith.constant 0 : i32
    %c0_i32_1 = arith.constant 0 : i32
    return %c0_i32, %c0_i32_0 : i32, i32
  }
  func.func @transform_1(%arg0: i32) -> (i32, i32) {
    %c0_i32 = arith.constant 0 : i32
    %c0_i32_0 = arith.constant 0 : i32
    %c0_i32_1 = arith.constant 0 : i32
    return %c0_i32, %c0_i32_0 : i32, i32
  }
  func.func @transform_2(%arg0: i32) -> (i32, i32) {
    %c0_i32 = arith.constant 0 : i32
    %c0_i32_0 = arith.constant 0 : i32
    %c0_i32_1 = arith.constant 0 : i32
    return %c0_i32, %c0_i32_0 : i32, i32
  }
  func.func @transform_3(%arg0: i32) -> (i32, i32) {
    %c0_i32 = arith.constant 0 : i32
    %c0_i32_0 = arith.constant 0 : i32
    %c0_i32_1 = arith.constant 0 : i32
    return %c0_i32, %c0_i32_0 : i32, i32
  }
  func.func @transform_4(%arg0: i32) -> (i32, i32) {
    %c0_i32 = arith.constant 0 : i32
    %c0_i32_0 = arith.constant 0 : i32
    %c0_i32_1 = arith.constant 0 : i32
    return %c0_i32, %c0_i32_0 : i32, i32
  }
  func.func @transform_5(%arg0: i32) -> (i32, i32) {
    %c0_i32 = arith.constant 0 : i32
    %c0_i32_0 = arith.constant 0 : i32
    %c0_i32_1 = arith.constant 0 : i32
    return %c0_i32, %c0_i32_0 : i32, i32
  }
  func.func @transform_6(%arg0: i32) -> (i32, i32) {
    %c0_i32 = arith.constant 0 : i32
    %c0_i32_0 = arith.constant 0 : i32
    %c0_i32_1 = arith.constant 0 : i32
    return %c0_i32, %c0_i32_0 : i32, i32
  }
  func.func @transform_7(%arg0: i32) -> (i32, i32, i32) {
    %c0_i32 = arith.constant 0 : i32
    %c0_i32_0 = arith.constant 0 : i32
    %c0_i32_1 = arith.constant 0 : i32
    %c0_i32_2 = arith.constant 0 : i32
    return %c0_i32, %c0_i32_0, %c0_i32_1 : i32, i32, i32
  }
}

</mosaic_0001>

<bundles_post_ra>
// kernel: forward.1
= control target key start
LH: loop header
LB: loop body
LE: loop exit
PB: predicated region body
PF: predicated region fallthrough
CT: control target
= control target key end

     0   :  { %vm2655_vm0 = vmmov 0   ;;  %vm1805_vm1 = vcmask 1041409   ;;  %vm1807_vm2 = vcmask 1042434   ;;  %vm1809_vm3 = vcmask 1043459   ;;  %s3229_s1 = inlined_call_operand.vmem [shape: bf16[1792,128], index: 1, kind: input, shape index: {}]   ;;  %s3230_s0 = inlined_call_operand.vmem [shape: bf16[64,1792], index: 0, kind: input, shape index: {}]   ;;  %s3231_s2 = inlined_call_operand.vmem [shape: f32[1,128], index: 2, kind: input, shape index: {}]   ;;  %s3232_s3 = inlined_call_operand.vmem [shape: f32[1,128], index: 3, kind: input, shape index: {}]   ;;  %s3233_s5 = inlined_call_operand.vmem [shape: f32[8,6], index: 5, kind: input, shape index: {}]   ;;  %s3234_s4 = inlined_call_operand.vmem [shape: f32[6,8], index: 4, kind: input, shape index: {}]   ;;  %s3235_s6 = inlined_call_operand.<no memory space> [shape: f32[1,1], index: 6, kind: input, shape index: {}]   ;;  %s3236_s7 = inlined_call_operand.vmem [shape: f32[1,6,6], index: 7, kind: output, shape index: {}]  }
   0x1   :  { %v2458_v0 = vld [vmem:[%s3229_s1 + $0x40] sm:$0xff]   ;;  %v2462_v4 = vld [vmem:[%s3229_s1 + $0x48] sm:$0xff]   ;;  %v2466_v8 = vld [vmem:[%s3229_s1 + $0x50] sm:$0xff]   ;;  %vm1811_vm4 = vcmask 1044484   ;;  %vm1813_vm5 = vcmask 1045509   ;;  %vm1815_vm6 = vcmask 1046534  }
   0x2   :  { %v2459_v1 = vld [vmem:[%s3229_s1 + $0xc0] sm:$0xff]   ;;  %2146 = vmatprep.subr.bf16.mxu0 %v2458_v0  ;;  %v2463_v5 = vld [vmem:[%s3229_s1 + $0xc8] sm:$0xff]   ;;  %v2467_v9 = vld [vmem:[%s3229_s1 + $0xd0] sm:$0xff]   ;;  %vm1817_vm7 = vcmask 1047559   ;;  %vm1819_vm8 = vcmask 64512   ;;  %vm1968_vm9 = vcmask 46080  }
   0x3   :  { %v2460_v2 = vld [vmem:[%s3229_s1] sm:$0xff]   ;;  %2186 = vmatprep.subr.bf16.mxu1 %v2459_v1  ;;  %v2464_v6 = vld [vmem:[%s3229_s1 + $0x8] sm:$0xff]   ;;  %v2468_v10 = vld [vmem:[%s3229_s1 + $0x10] sm:$0xff]  }
   0x4   :  { %v2461_v3 = vld [vmem:[%s3229_s1 + $0x80] sm:$0xff]   ;;  %2147 = vmatpush3.bf16.msra.mxu0 %v2460_v2  ;;  %v2465_v7 = vld [vmem:[%s3229_s1 + $0x88] sm:$0xff]   ;;  %v2469_v11 = vld [vmem:[%s3229_s1 + $0x90] sm:$0xff]  }
   0x5   :  { %2187 = vmatpush3.bf16.msra.mxu1 %v2461_v3  ;;  %2148 = vmatprep.subr.bf16.mxu0 %v2462_v4  ;;  %v2470_v12 = vld [vmem:[%s3229_s1 + $0x58] sm:$0xff]   ;;  %v2474_v16 = vld [vmem:[%s3229_s1 + $0x60] sm:$0xff]   ;;  %v2478_v20 = vld [vmem:[%s3229_s1 + $0x68] sm:$0xff]  }
   0x6   :  { %2188 = vmatprep.subr.bf16.mxu1 %v2463_v5  ;;  %v2471_v13 = vld [vmem:[%s3229_s1 + $0xd8] sm:$0xff]   ;;  %v2475_v17 = vld [vmem:[%s3229_s1 + $0xe0] sm:$0xff]   ;;  %v2479_v21 = vld [vmem:[%s3229_s1 + $0xe8] sm:$0xff]  }
   0x7   :  { %v2472_v14 = vld [vmem:[%s3229_s1 + $0x18] sm:$0xff]   ;;  %v2476_v18 = vld [vmem:[%s3229_s1 + $0x20] sm:$0xff]   ;;  %v2480_v22 = vld [vmem:[%s3229_s1 + $0x28] sm:$0xff]  }
   0x8   :  { %2149 = vmatpush3.bf16.msra.mxu0 %v2464_v6  ;;  %v2473_v15 = vld [vmem:[%s3229_s1 + $0x98] sm:$0xff]   ;;  %v2477_v19 = vld [vmem:[%s3229_s1 + $0xa0] sm:$0xff]   ;;  %v2481_v23 = vld [vmem:[%s3229_s1 + $0xa8] sm:$0xff]  }
   0x9   :  { %2189 = vmatpush3.bf16.msra.mxu1 %v2465_v7  ;;  %2150 = vmatprep.subr.bf16.mxu0 %v2466_v8  ;;  %v2482_v24 = vld [vmem:[%s3229_s1 + $0x70] sm:$0xff]   ;;  %v2486_v28 = vld [vmem:[%s3229_s1 + $0x78] sm:$0xff]   ;;  %v2493_v34 = vld [vmem:[%s3230_s0 + $0x8] ss:$56 sps:$4 sm:$0xff]  }
   0xa   :  { %2190 = vmatprep.subr.bf16.mxu1 %v2467_v9  ;;  %v2483_v25 = vld [vmem:[%s3229_s1 + $0xf0] sm:$0xff]   ;;  %v2487_v29 = vld [vmem:[%s3229_s1 + $0xf8] sm:$0xff]   ;;  %v2495_v35 = vld [vmem:[%s3230_s0 + $0xc] ss:$56 sps:$4 sm:$0xff]  }
   0xb   :  { %v2484_v26 = vld [vmem:[%s3229_s1 + $0x30] sm:$0xff]   ;;  %v2488_v30 = vld [vmem:[%s3229_s1 + $0x38] sm:$0xff]   ;;  %v2496_v36 = vld [vmem:[%s3229_s1 + $0x140] sm:$0xff]   ;;  %1364 = vmatprep.mubr.bf16.mxu1 %v2495_v35 }
   0xc   :  { %2151 = vmatpush3.bf16.msra.mxu0 %v2468_v10  ;;  %v2485_v27 = vld [vmem:[%s3229_s1 + $0xb0] sm:$0xff]   ;;  %v2489_v31 = vld [vmem:[%s3229_s1 + $0xb8] sm:$0xff]   ;;  %v2497_v37 = vld [vmem:[%s3229_s1 + $0x1c0] sm:$0xff]  }
   0xd   :  { %2191 = vmatpush3.bf16.msra.mxu1 %v2469_v11  ;;  %2152 = vmatprep.subr.bf16.mxu0 %v2470_v12  ;;  %v2490_v32 = vld [vmem:[%s3230_s0] ss:$56 sps:$4 sm:$0xff]   ;;  %v2492_v33 = vld [vmem:[%s3230_s0 + $0x4] ss:$56 sps:$4 sm:$0xff]   ;;  %v2500_v40 = vld [vmem:[%s3229_s1 + $0x148] sm:$0xff]  }
   0xe   :  { %2192 = vmatprep.subr.bf16.mxu1 %v2471_v13  ;;  %1299 = vmatprep.mubr.bf16.mxu0 %v2492_v33  ;;  %v2498_v38 = vld [vmem:[%s3229_s1 + $0x100] sm:$0xff]   ;;  %v2501_v41 = vld [vmem:[%s3229_s1 + $0x1c8] sm:$0xff]   ;;  %v2506_v45 = vld [vmem:[%s3230_s0 + $0x7c] ss:$56 sps:$4 sm:$0xff]  }
   0xf   :  { %v2499_v39 = vld [vmem:[%s3229_s1 + $0x180] sm:$0xff]   ;;  %v2502_v42 = vld [vmem:[%s3229_s1 + $0x108] sm:$0xff]   ;;  %v2509_v47 = vld [vmem:[%s3230_s0 + $0x78] ss:$56 sps:$4 sm:$0xff]  }
  0x10   :  { %2153 = vmatpush3.bf16.msra.mxu0 %v2472_v14  ;;  %v2503_v43 = vld [vmem:[%s3229_s1 + $0x188] sm:$0xff]   ;;  %v2510_v48 = vld [vmem:[%s3229_s1 + $0x150] sm:$0xff]   ;;  %v2514_v52 = vld [vmem:[%s3229_s1 + $0x158] sm:$0xff]  }
  0x11   :  { %2193 = vmatpush3.bf16.msra.mxu1 %v2473_v15  ;;  %2154 = vmatprep.subr.bf16.mxu0 %v2474_v16  ;;  %v2504_v44 = vld [vmem:[%s3230_s0 + $0x74] ss:$56 sps:$4 sm:$0xff]   ;;  %v2508_v46 = vld [vmem:[%s3230_s0 + $0x70] ss:$56 sps:$4 sm:$0xff]   ;;  %v2515_v53 = vld [vmem:[%s3229_s1 + $0x1d8] sm:$0xff]  }
  0x12   :  { %2194 = vmatprep.subr.bf16.mxu1 %v2475_v17  ;;  %v2511_v49 = vld [vmem:[%s3229_s1 + $0x1d0] sm:$0xff]   ;;  %v2516_v54 = vld [vmem:[%s3229_s1 + $0x118] sm:$0xff]   ;;  %v2520_v57 = vld [vmem:[%s3230_s0 + $0xec] ss:$56 sps:$4 sm:$0xff]  }
  0x13   :  { %v2512_v50 = vld [vmem:[%s3229_s1 + $0x110] sm:$0xff]   ;;  %v2517_v55 = vld [vmem:[%s3229_s1 + $0x198] sm:$0xff]   ;;  %v2523_v59 = vld [vmem:[%s3230_s0 + $0xe8] ss:$56 sps:$4 sm:$0xff]  }
  0x14   :  { %2155 = vmatpush3.bf16.msra.mxu0 %v2476_v18  ;;  %v2513_v51 = vld [vmem:[%s3229_s1 + $0x190] sm:$0xff]   ;;  %v2518_v56 = vld [vmem:[%s3230_s0 + $0xe4] ss:$56 sps:$4 sm:$0xff]   ;;  %v2522_v58 = vld [vmem:[%s3230_s0 + $0xe0] ss:$56 sps:$4 sm:$0xff]  }
  0x15   :  { %2195 = vmatpush3.bf16.msra.mxu1 %v2477_v19  ;;  %2156 = vmatprep.subr.bf16.mxu0 %v2478_v20  ;;  %v2524_v60 = vld [vmem:[%s3229_s1 + $0x160] sm:$0xff]   ;;  %v2528_v0 = vld [vmem:[%s3229_s1 + $0x168] sm:$0xff]   ;;  %v2534_v5 = vld [vmem:[%s3230_s0 + $0x15c] ss:$56 sps:$4 sm:$0xff]  }
  0x16   :  { %2196 = vmatprep.subr.bf16.mxu1 %v2479_v21  ;;  %v2525_v61 = vld [vmem:[%s3229_s1 + $0x1e0] sm:$0xff]   ;;  %v2529_v1 = vld [vmem:[%s3229_s1 + $0x1e8] sm:$0xff]   ;;  %v2537_v7 = vld [vmem:[%s3230_s0 + $0x158] ss:$56 sps:$4 sm:$0xff]  }
  0x17   :  { %v2526_v62 = vld [vmem:[%s3229_s1 + $0x120] sm:$0xff]   ;;  %v2530_v2 = vld [vmem:[%s3229_s1 + $0x128] sm:$0xff]   ;;  %v2538_v8 = vld [vmem:[%s3229_s1 + $0x170] sm:$0xff]  }
  0x18   :  { %2157 = vmatpush3.bf16.msra.mxu0 %v2480_v22  ;;  %v2527_v63 = vld [vmem:[%s3229_s1 + $0x1a0] sm:$0xff]   ;;  %v2531_v3 = vld [vmem:[%s3229_s1 + $0x1a8] sm:$0xff]   ;;  %v2539_v9 = vld [vmem:[%s3229_s1 + $0x1f0] sm:$0xff]  }
  0x19   :  { %2197 = vmatpush3.bf16.msra.mxu1 %v2481_v23  ;;  %2158 = vmatprep.subr.bf16.mxu0 %v2482_v24  ;;  %v2532_v4 = vld [vmem:[%s3230_s0 + $0x154] ss:$56 sps:$4 sm:$0xff]   ;;  %v2536_v6 = vld [vmem:[%s3230_s0 + $0x150] ss:$56 sps:$4 sm:$0xff]   ;;  %v2542_v12 = vld [vmem:[%s3229_s1 + $0x178] sm:$0xff]  }
  0x1a   :  { %2198 = vmatprep.subr.bf16.mxu1 %v2483_v25  ;;  %v2540_v10 = vld [vmem:[%s3229_s1 + $0x130] sm:$0xff]   ;;  %v2543_v13 = vld [vmem:[%s3229_s1 + $0x1f8] sm:$0xff]   ;;  %v2552_v20 = vld [vmem:[%s3229_s1 + $0x240] sm:$0xff]  }
  0x1b   :  { %v2541_v11 = vld [vmem:[%s3229_s1 + $0x1b0] sm:$0xff]   ;;  %v2544_v14 = vld [vmem:[%s3229_s1 + $0x138] sm:$0xff]   ;;  %v2553_v21 = vld [vmem:[%s3229_s1 + $0x2c0] sm:$0xff]  }
  0x1c   :  { %2159 = vmatpush3.bf16.msra.mxu0 %v2484_v26  ;;  %v2545_v15 = vld [vmem:[%s3229_s1 + $0x1b8] sm:$0xff]   ;;  %v2546_v16 = vld [vmem:[%s3230_s0 + $0x10] ss:$56 sps:$4 sm:$0xff]   ;;  %v2548_v17 = vld [vmem:[%s3230_s0 + $0x14] ss:$56 sps:$4 sm:$0xff]  }
  0x1d   :  { %2199 = vmatpush3.bf16.msra.mxu1 %v2485_v27  ;;  %2160 = vmatprep.subr.bf16.mxu0 %v2486_v28  ;;  %v2549_v18 = vld [vmem:[%s3230_s0 + $0x18] ss:$56 sps:$4 sm:$0xff]   ;;  %v2551_v19 = vld [vmem:[%s3230_s0 + $0x1c] ss:$56 sps:$4 sm:$0xff]   ;;  %v2554_v22 = vld [vmem:[%s3229_s1 + $0x200] sm:$0xff]  }
  0x1e   :  { %2200 = vmatprep.subr.bf16.mxu1 %v2487_v29  ;;  %v2555_v23 = vld [vmem:[%s3229_s1 + $0x280] sm:$0xff]   ;;  %v2556_v24 = vld [vmem:[%s3229_s1 + $0x248] sm:$0xff]   ;;  %v2567_v33 = vld [vmem:[%s3229_s1 + $0x2d0] sm:$0xff]  }
  0x1f   :  { %v2557_v25 = vld [vmem:[%s3229_s1 + $0x2c8] sm:$0xff]   ;;  %v2560_v28 = vld [vmem:[%s3230_s0 + $0x84] ss:$56 sps:$4 sm:$0xff]   ;;  %v2569_v35 = vld [vmem:[%s3229_s1 + $0x290] sm:$0xff]  }
  0x20   :  { %2161 = vmatpush3.bf16.msra.mxu0 %v2488_v30  ;;  %v2558_v26 = vld [vmem:[%s3229_s1 + $0x208] sm:$0xff]   ;;  %v2564_v30 = vld [vmem:[%s3230_s0 + $0x80] ss:$56 sps:$4 sm:$0xff]  }
  0x21   :  { %2201 = vmatpush3.bf16.msra.mxu1 %v2489_v31  ;;  %2226 = vmatprep.subr.bf16.mxu0 %v2496_v36  ;;  %v2559_v27 = vld [vmem:[%s3229_s1 + $0x288] sm:$0xff]   ;;  %v2570_v36 = vld [vmem:[%s3229_s1 + $0x258] sm:$0xff]  }
  0x22   :  { %2266 = vmatprep.subr.bf16.mxu1 %v2497_v37  ;;  %v2562_v29 = vld [vmem:[%s3230_s0 + $0x8c] ss:$56 sps:$4 sm:$0xff]   ;;  %v2565_v31 = vld [vmem:[%s3230_s0 + $0x88] ss:$56 sps:$4 sm:$0xff]   ;;  %v2571_v37 = vld [vmem:[%s3229_s1 + $0x2d8] sm:$0xff]  }
  0x23   :  { %1300 = vmatmul.mubr.bf16.vlgmr.msra.gmra.mrb[0].mxu0 %v2490_v32  ;;  %v2566_v32 = vld [vmem:[%s3229_s1 + $0x250] sm:$0xff]  }
  0x24   :  { %1365 = vmatmul.mubr.bf16.vlgmr.msra.gmra.mrb[0].mxu1 %v2493_v34  ;;  %2227 = vmatpush3.bf16.msra.mxu0 %v2498_v38  ;;  %v2568_v34 = vld [vmem:[%s3229_s1 + $0x210] sm:$0xff]   ;;  %v2572_v38 = vld [vmem:[%s3229_s1 + $0x218] sm:$0xff]  }
  0x25   :  { %2267 = vmatpush3.bf16.msra.mxu1 %v2499_v39  ;;  %2228 = vmatprep.subr.bf16.mxu0 %v2500_v40  ;;  %v2573_v39 = vld [vmem:[%s3229_s1 + $0x298] sm:$0xff]   ;;  %v2574_v40 = vld [vmem:[%s3230_s0 + $0xf4] ss:$56 sps:$4 sm:$0xff]  }
  0x26   :  { %2268 = vmatprep.subr.bf16.mxu1 %v2501_v41  ;;  %1307 = vmatprep.mubr.bf16.mxu0 %v2504_v44  ;;  %v2576_v41 = vld [vmem:[%s3230_s0 + $0xfc] ss:$56 sps:$4 sm:$0xff]   ;;  %v2580_v44 = vld [vmem:[%s3229_s1 + $0x260] sm:$0xff]  }
  0x27   :  { %1372 = vmatprep.mubr.bf16.mxu1 %v2506_v45  ;;  %v2581_v45 = vld [vmem:[%s3229_s1 + $0x2e0] sm:$0xff]  }
  0x28   :  { %2229 = vmatpush3.bf16.msra.mxu0 %v2502_v42  ;;  %v2578_v42 = vld [vmem:[%s3230_s0 + $0xf0] ss:$56 sps:$4 sm:$0xff]  }
  0x29   :  { %2269 = vmatpush3.bf16.msra.mxu1 %v2503_v43  ;;  %2230 = vmatprep.subr.bf16.mxu0 %v2510_v48  ;;  %v2579_v43 = vld [vmem:[%s3230_s0 + $0xf8] ss:$56 sps:$4 sm:$0xff]   ;;  %v2584_v48 = vld [vmem:[%s3229_s1 + $0x268] sm:$0xff]  }
  0x2a   :  { %2270 = vmatprep.subr.bf16.mxu1 %v2511_v49  ;;  %v2585_v49 = vld [vmem:[%s3229_s1 + $0x2e8] sm:$0xff]  }
  0x2b   :  { %1308 = vmatmul.mubr.bf16.gmra.mrb[4].mxu0 %v2508_v46  ;;  %v2582_v46 = vld [vmem:[%s3229_s1 + $0x220] sm:$0xff]  }
  0x2c   :  { %1373 = vmatmul.mubr.bf16.gmra.mrb[4].mxu1 %v2509_v47  ;;  %2231 = vmatpush3.bf16.msra.mxu0 %v2512_v50  ;;  %v2583_v47 = vld [vmem:[%s3229_s1 + $0x2a0] sm:$0xff]   ;;  %v2586_v50 = vld [vmem:[%s3229_s1 + $0x228] sm:$0xff]  }
  0x2d   :  { %2271 = vmatpush3.bf16.msra.mxu1 %v2513_v51  ;;  %2232 = vmatprep.subr.bf16.mxu0 %v2514_v52  ;;  %v2587_v51 = vld [vmem:[%s3229_s1 + $0x2a8] sm:$0xff]   ;;  %v2588_v52 = vld [vmem:[%s3230_s0 + $0x164] ss:$56 sps:$4 sm:$0xff]  }
  0x2e   :  { %2272 = vmatprep.subr.bf16.mxu1 %v2515_v53  ;;  %1315 = vmatprep.mubr.bf16.mxu0 %v2518_v56  ;;  %v2590_v53 = vld [vmem:[%s3230_s0 + $0x16c] ss:$56 sps:$4 sm:$0xff]   ;;  %v2594_v56 = vld [vmem:[%s3229_s1 + $0x270] sm:$0xff]  }
  0x2f   :  { %1380 = vmatprep.mubr.bf16.mxu1 %v2520_v57  ;;  %v2595_v57 = vld [vmem:[%s3229_s1 + $0x2f0] sm:$0xff]  }
  0x30   :  { %2233 = vmatpush3.bf16.msra.mxu0 %v2516_v54  ;;  %v2592_v54 = vld [vmem:[%s3230_s0 + $0x160] ss:$56 sps:$4 sm:$0xff]  }
  0x31   :  { %2273 = vmatpush3.bf16.msra.mxu1 %v2517_v55  ;;  %2234 = vmatprep.subr.bf16.mxu0 %v2524_v60  ;;  %v2593_v55 = vld [vmem:[%s3230_s0 + $0x168] ss:$56 sps:$4 sm:$0xff]   ;;  %v2598_v60 = vld [vmem:[%s3229_s1 + $0x278] sm:$0xff]  }
  0x32   :  { %2274 = vmatprep.subr.bf16.mxu1 %v2525_v61  ;;  %v2599_v61 = vld [vmem:[%s3229_s1 + $0x2f8] sm:$0xff]  }
  0x33   :  { %1316 = vmatmul.mubr.bf16.gmra.mrb[8].mxu0 %v2522_v58  ;;  %v2596_v58 = vld [vmem:[%s3229_s1 + $0x230] sm:$0xff]  }
  0x34   :  { %1381 = vmatmul.mubr.bf16.gmra.mrb[8].mxu1 %v2523_v59  ;;  %2235 = vmatpush3.bf16.msra.mxu0 %v2526_v62  ;;  %v2597_v59 = vld [vmem:[%s3229_s1 + $0x2b0] sm:$0xff]   ;;  %v2600_v62 = vld [vmem:[%s3229_s1 + $0x238] sm:$0xff]  }
  0x35   :  { %2275 = vmatpush3.bf16.msra.mxu1 %v2527_v63  ;;  %2236 = vmatprep.subr.bf16.mxu0 %v2528_v0  ;;  %v2601_v63 = vld [vmem:[%s3229_s1 + $0x2b8] sm:$0xff]  }
  0x36   :  { %2276 = vmatprep.subr.bf16.mxu1 %v2529_v1  ;;  %1323 = vmatprep.mubr.bf16.mxu0 %v2532_v4  ;;  %v2602_v0 = vld [vmem:[%s3230_s0 + $0x20] ss:$56 sps:$4 sm:$0xff]   ;;  %v2604_v1 = vld [vmem:[%s3230_s0 + $0x24] ss:$56 sps:$4 sm:$0xff]  }
  0x37   :  { %1388 = vmatprep.mubr.bf16.mxu1 %v2534_v5  ;;  %v2608_v4 = vld [vmem:[%s3229_s1 + $0x340] sm:$0xff]  }
  0x38   :  { %2237 = vmatpush3.bf16.msra.mxu0 %v2530_v2  ;;  %v2605_v2 = vld [vmem:[%s3230_s0 + $0x28] ss:$56 sps:$4 sm:$0xff]  }
  0x39   :  { %2277 = vmatpush3.bf16.msra.mxu1 %v2531_v3  ;;  %2238 = vmatprep.subr.bf16.mxu0 %v2538_v8  ;;  %v2607_v3 = vld [vmem:[%s3230_s0 + $0x2c] ss:$56 sps:$4 sm:$0xff]  }
  0x3a   :  { %2278 = vmatprep.subr.bf16.mxu1 %v2539_v9  ;;  %v2609_v5 = vld [vmem:[%s3229_s1 + $0x300] sm:$0xff]   ;;  %v2612_v8 = vld [vmem:[%s3230_s0 + $0x94] ss:$56 sps:$4 sm:$0xff]  }
  0x3b   :  { %1324 = vmatmul.mubr.bf16.gmra.mrb[12].mxu0 %v2536_v6  ;;  %v2610_v6 = vld [vmem:[%s3229_s1 + $0x348] sm:$0xff]   ;;  %v2614_v9 = vld [vmem:[%s3230_s0 + $0x9c] ss:$56 sps:$4 sm:$0xff]  }
  0x3c   :  { %1389 = vmatmul.mubr.bf16.gmra.mrb[12].mxu1 %v2537_v7  ;;  %2239 = vmatpush3.bf16.msra.mxu0 %v2540_v10  ;;  %v2611_v7 = vld [vmem:[%s3229_s1 + $0x308] sm:$0xff]  }
  0x3d   :  { %2279 = vmatpush3.bf16.msra.mxu1 %v2541_v11  ;;  %2240 = vmatprep.subr.bf16.mxu0 %v2542_v12  ;;  %v2616_v10 = vld [vmem:[%s3230_s0 + $0x90] ss:$56 sps:$4 sm:$0xff]  }
  0x3e   :  { %2280 = vmatprep.subr.bf16.mxu1 %v2543_v13  ;;  %1429 = vmatprep.mubr.bf16.mxu0 %v2548_v17  ;;  %v2617_v11 = vld [vmem:[%s3230_s0 + $0x98] ss:$56 sps:$4 sm:$0xff]   ;;  %v2624_v17 = vld [vmem:[%s3230_s0 + $0x10c] ss:$56 sps:$4 sm:$0xff]  }
  0x3f   :  { %1494 = vmatprep.mubr.bf16.mxu1 %v2551_v19  ;;  %v2618_v12 = vld [vmem:[%s3229_s1 + $0x350] sm:$0xff]   ;;  %v2627_v19 = vld [vmem:[%s3230_s0 + $0x108] ss:$56 sps:$4 sm:$0xff]  }
  0x40   :  { %2241 = vmatpush3.bf16.msra.mxu0 %v2544_v14  ;;  %v2619_v13 = vld [vmem:[%s3229_s1 + $0x310] sm:$0xff]   ;;  %v2620_v14 = vld [vmem:[%s3229_s1 + $0x358] sm:$0xff]  }
  0x41   :  { %2281 = vmatpush3.bf16.msra.mxu1 %v2545_v15  ;;  %2306 = vmatprep.subr.bf16.mxu0 %v2552_v20  ;;  %v2621_v15 = vld [vmem:[%s3229_s1 + $0x318] sm:$0xff]   ;;  %v2628_v20 = vld [vmem:[%s3229_s1 + $0x360] sm:$0xff]  }
  0x42   :  { %2346 = vmatprep.subr.bf16.mxu1 %v2553_v21  ;;  %v2629_v21 = vld [vmem:[%s3229_s1 + $0x320] sm:$0xff]  }
  0x43   :  { %1430 = vmatmul.mubr.bf16.vlgmr.msra.gmra.mrb[16].mxu0 %v2546_v16  ;;  %v2622_v16 = vld [vmem:[%s3230_s0 + $0x104] ss:$56 sps:$4 sm:$0xff]  }
  0x44   :  { %1495 = vmatmul.mubr.bf16.vlgmr.msra.gmra.mrb[16].mxu1 %v2549_v18  ;;  %2307 = vmatpush3.bf16.msra.mxu0 %v2554_v22  ;;  %v2626_v18 = vld [vmem:[%s3230_s0 + $0x100] ss:$56 sps:$4 sm:$0xff]   ;;  %v2630_v22 = vld [vmem:[%s3229_s1 + $0x368] sm:$0xff]  }
  0x45   :  { %2347 = vmatpush3.bf16.msra.mxu1 %v2555_v23  ;;  %2308 = vmatprep.subr.bf16.mxu0 %v2556_v24  ;;  %v2632_v23 = vld [vmem:[%s3230_s0 + $0x174] ss:$56 sps:$4 sm:$0xff]  }
  0x46   :  { %2348 = vmatprep.subr.bf16.mxu1 %v2557_v25  ;;  %1437 = vmatprep.mubr.bf16.mxu0 %v2560_v28  ;;  %v2631_v24 = vld [vmem:[%s3229_s1 + $0x328] sm:$0xff]   ;;  %v2634_v25 = vld [vmem:[%s3230_s0 + $0x17c] ss:$56 sps:$4 sm:$0xff]   ;;  %v2637_v28 = vld [vmem:[%s3230_s0 + $0x178] ss:$56 sps:$4 sm:$0xff]  }
  0x47   :  { %1502 = vmatprep.mubr.bf16.mxu1 %v2562_v29  ;;  %v2639_v29 = vld [vmem:[%s3229_s1 + $0x330] sm:$0xff]  }
  0x48   :  { %2309 = vmatpush3.bf16.msra.mxu0 %v2558_v26  ;;  %v2638_v26 = vld [vmem:[%s3229_s1 + $0x370] sm:$0xff]  }
  0x49   :  { %2349 = vmatpush3.bf16.msra.mxu1 %v2559_v27  ;;  %2310 = vmatprep.subr.bf16.mxu0 %v2566_v32  ;;  %v2636_v27 = vld [vmem:[%s3230_s0 + $0x170] ss:$56 sps:$4 sm:$0xff]   ;;  %v2647_v32 = vld [vmem:[%s3230_s0 + $0x184] ss:$56 sps:$4 sm:$0xff]  }
  0x4a   :  { %2350 = vmatprep.subr.bf16.mxu1 %v2567_v33  ;;  %v2641_v33 = vld [vmem:[%s3229_s1 + $0x338] sm:$0xff]  }
  0x4b   :  { %1438 = vmatmul.mubr.bf16.gmra.mrb[20].mxu0 %v2564_v30  ;;  %v2640_v30 = vld [vmem:[%s3229_s1 + $0x378] sm:$0xff]  }
  0x4c   :  { %1503 = vmatmul.mubr.bf16.gmra.mrb[20].mxu1 %v2565_v31  ;;  %2311 = vmatpush3.bf16.msra.mxu0 %v2568_v34  ;;  %v2644_v31 = vld [vmem:[%s3230_s0 + $0x34] ss:$56 sps:$4 sm:$0xff]   ;;  %v2642_v34 = vld [vmem:[%s3230_s0 + $0x30] ss:$56 sps:$4 sm:$0xff]  }
  0x4d   :  { %2351 = vmatpush3.bf16.msra.mxu1 %v2569_v35  ;;  %2312 = vmatprep.subr.bf16.mxu0 %v2570_v36  ;;  %v2645_v35 = vld [vmem:[%s3230_s0 + $0x180] ss:$56 sps:$4 sm:$0xff]   ;;  %v2648_v36 = vld [vmem:[%s3230_s0 + $0xa4] ss:$56 sps:$4 sm:$0xff]  }
  0x4e   :  { %2352 = vmatprep.subr.bf16.mxu1 %v2571_v37  ;;  %1445 = vmatprep.mubr.bf16.mxu0 %v2574_v40  ;;  %v2650_v37 = vld [vmem:[%s3230_s0 + $0xa0] ss:$56 sps:$4 sm:$0xff]  }
  0x4f   :  { %1510 = vmatprep.mubr.bf16.mxu1 %v2576_v41  ;;  %v1974_v41 = vld [vmem:[%s3231_s2] ss:$0 sm:$0xff] }
  0x50   :  { %2313 = vmatpush3.bf16.msra.mxu0 %v2572_v38  ;;  %v2651_v38 = vld [vmem:[%s3230_s0 + $0x114] ss:$56 sps:$4 sm:$0xff]  }
  0x51   :  { %2353 = vmatpush3.bf16.msra.mxu1 %v2573_v39  ;;  %2314 = vmatprep.subr.bf16.mxu0 %v2580_v44  ;;  %v2653_v39 = vld [vmem:[%s3230_s0 + $0x110] ss:$56 sps:$4 sm:$0xff]  }
  0x52   :  { %2354 = vmatprep.subr.bf16.mxu1 %v2581_v45 }
  0x53   :  { %1446 = vmatmul.mubr.bf16.gmra.mrb[24].mxu0 %v2578_v42 }
  0x54   :  { %1511 = vmatmul.mubr.bf16.gmra.mrb[24].mxu1 %v2579_v43  ;;  %2315 = vmatpush3.bf16.msra.mxu0 %v2582_v46 }
  0x55   :  { %2355 = vmatpush3.bf16.msra.mxu1 %v2583_v47  ;;  %2316 = vmatprep.subr.bf16.mxu0 %v2584_v48 }
  0x56   :  { %2356 = vmatprep.subr.bf16.mxu1 %v2585_v49  ;;  %1453 = vmatprep.mubr.bf16.mxu0 %v2588_v52 }
  0x57   :  { %1518 = vmatprep.mubr.bf16.mxu1 %v2590_v53 }
  0x58   :  { %2317 = vmatpush3.bf16.msra.mxu0 %v2586_v50 }
  0x59   :  { %2357 = vmatpush3.bf16.msra.mxu1 %v2587_v51  ;;  %2318 = vmatprep.subr.bf16.mxu0 %v2594_v56 }
  0x5a   :  { %2358 = vmatprep.subr.bf16.mxu1 %v2595_v57 }
  0x5b   :  { %1454 = vmatmul.mubr.bf16.gmra.mrb[28].mxu0 %v2592_v54 }
  0x5c   :  { %1519 = vmatmul.mubr.bf16.gmra.mrb[28].mxu1 %v2593_v55  ;;  %2319 = vmatpush3.bf16.msra.mxu0 %v2596_v58 }
  0x5d   :  { %2359 = vmatpush3.bf16.msra.mxu1 %v2597_v59  ;;  %2320 = vmatprep.subr.bf16.mxu0 %v2598_v60 }
  0x5e   :  { %2360 = vmatprep.subr.bf16.mxu1 %v2599_v61  ;;  %1559 = vmatprep.mubr.bf16.mxu0 %v2604_v1 }
  0x5f   :  { %1624 = vmatprep.mubr.bf16.mxu1 %v2607_v3 }
  0x60   :  { %2321 = vmatpush3.bf16.msra.mxu0 %v2600_v62 }
  0x61   :  { %2361 = vmatpush3.bf16.msra.mxu1 %v2601_v63  ;;  %2386 = vmatprep.subr.bf16.mxu0 %v2608_v4 }
  0x62   :  { %2440 = vmatprep.subr.bf16.mxu1 %v2608_v4 }
  0x63   :  { %1560 = vmatmul.mubr.bf16.vlgmr.msra.gmra.mrb[32].mxu0 %v2602_v0 }
  0x64   :  { %1625 = vmatmul.mubr.bf16.vlgmr.msra.gmra.mrb[32].mxu1 %v2605_v2  ;;  %2387 = vmatpush3.bf16.msra.mxu0 %v2609_v5 }
  0x65   :  { %2448 = vmatpush3.bf16.msra.mxu1 %v2609_v5  ;;  %2388 = vmatprep.subr.bf16.mxu0 %v2610_v6 }
  0x66   :  { %2441 = vmatprep.subr.bf16.mxu1 %v2610_v6  ;;  %1567 = vmatprep.mubr.bf16.mxu0 %v2612_v8 }
  0x67   :  { %1632 = vmatprep.mubr.bf16.mxu1 %v2614_v9 }
  0x68   :  { %2389 = vmatpush3.bf16.msra.mxu0 %v2611_v7 }
  0x69   :  { %2449 = vmatpush3.bf16.msra.mxu1 %v2611_v7  ;;  %2390 = vmatprep.subr.bf16.mxu0 %v2618_v12 }
  0x6a   :  { %2442 = vmatprep.subr.bf16.mxu1 %v2618_v12 }
  0x6b   :  { %1568 = vmatmul.mubr.bf16.gmra.mrb[36].mxu0 %v2616_v10 }
  0x6c   :  { %1633 = vmatmul.mubr.bf16.gmra.mrb[36].mxu1 %v2617_v11  ;;  %2391 = vmatpush3.bf16.msra.mxu0 %v2619_v13 }
  0x6d   :  { %2450 = vmatpush3.bf16.msra.mxu1 %v2619_v13  ;;  %2392 = vmatprep.subr.bf16.mxu0 %v2620_v14 }
  0x6e   :  { %2443 = vmatprep.subr.bf16.mxu1 %v2620_v14  ;;  %1575 = vmatprep.mubr.bf16.mxu0 %v2622_v16 }
  0x6f   :  { %1640 = vmatprep.mubr.bf16.mxu1 %v2624_v17 }
  0x70   :  { %2393 = vmatpush3.bf16.msra.mxu0 %v2621_v15 }
  0x71   :  { %2451 = vmatpush3.bf16.msra.mxu1 %v2621_v15  ;;  %2394 = vmatprep.subr.bf16.mxu0 %v2628_v20 }
  0x72   :  { %2444 = vmatprep.subr.bf16.mxu1 %v2628_v20 }
  0x73   :  { %1576 = vmatmul.mubr.bf16.gmra.mrb[40].mxu0 %v2626_v18 }
  0x74   :  { %1641 = vmatmul.mubr.bf16.gmra.mrb[40].mxu1 %v2627_v19  ;;  %2395 = vmatpush3.bf16.msra.mxu0 %v2629_v21 }
  0x75   :  { %2452 = vmatpush3.bf16.msra.mxu1 %v2629_v21  ;;  %2396 = vmatprep.subr.bf16.mxu0 %v2630_v22 }
  0x76   :  { %2445 = vmatprep.subr.bf16.mxu1 %v2630_v22  ;;  %1583 = vmatprep.mubr.bf16.mxu0 %v2632_v23 }
  0x77   :  { %1648 = vmatprep.mubr.bf16.mxu1 %v2634_v25 }
  0x78   :  { %2397 = vmatpush3.bf16.msra.mxu0 %v2631_v24 }
  0x79   :  { %2453 = vmatpush3.bf16.msra.mxu1 %v2631_v24  ;;  %2398 = vmatprep.subr.bf16.mxu0 %v2638_v26 }
  0x7a   :  { %2446 = vmatprep.subr.bf16.mxu1 %v2638_v26 }
  0x7b   :  { %1584 = vmatmul.mubr.bf16.gmra.mrb[44].mxu0 %v2636_v27 }
  0x7c   :  { %1649 = vmatmul.mubr.bf16.gmra.mrb[44].mxu1 %v2637_v28  ;;  %2399 = vmatpush3.bf16.msra.mxu0 %v2639_v29 }
  0x7d   :  { %1689 = vmatprep.mubr.bf16.mxu0 %v2644_v31  ;;  %2454 = vmatpush3.bf16.msra.mxu1 %v2639_v29 }
  0x7e   :  { %2400 = vmatprep.subr.bf16.mxu0 %v2640_v30  ;;  %2447 = vmatprep.subr.bf16.mxu1 %v2640_v30 }
  0x7f   :  { %1713 = vmatprep.mubr.bf16.mxu1 %v2647_v32 }
  0x80   :  { %2401 = vmatpush3.bf16.msra.mxu0 %v2641_v33 }
  0x81   :  { %2455 = vmatpush3.bf16.msra.mxu1 %v2641_v33 }
  0x83   :  { %1690 = vmatmul.mubr.bf16.vlgmr.msra.gmra.mrb[48].mxu0 %v2642_v34 }
  0x84   :  { %1714 = vmatmul.mubr.bf16.vlgmr.msra.gmra.mrb[48].mxu1 %v2645_v35  ;;  %1697 = vmatprep.mubr.bf16.mxu0 %v2648_v36 }
  0x8b   :  { %1698 = vmatmul.mubr.bf16.gmra.mrb[52].mxu0 %v2650_v37 }
  0x8c   :  { %1705 = vmatprep.mubr.bf16.mxu0 %v2651_v38 }
  0x93   :  { %1706 = vmatmul.mubr.bf16.gmra.mrb[56].mxu0 %v2653_v39 }
  0xf6   :  { %v2162_v40 = vpop.f32.mrb[0].mxu0 }
  0xf7   :  { %v2163_v42 = vpop.f32.mrb[1].mxu0  ;;  %v2202_v43 = vpop.f32.mrb[0].mxu1 }
  0xf8   :  { %v2164_v44 = vadd.f32 %v2163_v42, %v2162_v40  ;;  %v2165_v45 = vpop.f32.mrb[2].mxu0  ;;  %v2203_v46 = vpop.f32.mrb[1].mxu1 }
  0xf9   :  { %v2166_v47 = vpop.f32.mrb[3].mxu0  ;;  %v2204_v48 = vadd.f32 %v2203_v46, %v2202_v43  ;;  %v2205_v49 = vpop.f32.mrb[2].mxu1 }
  0xfa   :  { %v1302_v50 = vadd.f32 %v2164_v44, %v1974_v41  ;;  %v2167_v51 = vadd.f32 %v2166_v47, %v2165_v45  ;;  %v2206_v52 = vpop.f32.mrb[3].mxu1 }
  0xfb   :  { %v2207_v53 = vadd.f32 %v2206_v52, %v2205_v49 }
  0xfc   :  { %v1305_v54 = vadd.f32 %v2167_v51, %v1974_v41  ;;  %v1367_v55 = vadd.f32 %v2204_v48, %v1302_v50 }
  0xfe   :  { %v1370_v56 = vadd.f32 %v2207_v53, %v1305_v54  ;;  %v2168_v57 = vpop.f32.mrb[4].mxu0 }
  0xff   :  { %v2169_v58 = vpop.f32.mrb[5].mxu0  ;;  %v2208_v59 = vpop.f32.mrb[4].mxu1 }
 0x100   :  { %v2170_v60 = vadd.f32 %v2169_v58, %v2168_v57  ;;  %v2171_v61 = vpop.f32.mrb[6].mxu0  ;;  %v2209_v62 = vpop.f32.mrb[5].mxu1 }
 0x101   :  { %v2172_v63 = vpop.f32.mrb[7].mxu0  ;;  %v2210_v0 = vadd.f32 %v2209_v62, %v2208_v59  ;;  %v2211_v1 = vpop.f32.mrb[6].mxu1 }
 0x102   :  { %v1310_v2 = vadd.f32 %v2170_v60, %v1974_v41  ;;  %v2173_v3 = vadd.f32 %v2172_v63, %v2171_v61  ;;  %v2212_v4 = vpop.f32.mrb[7].mxu1 }
 0x103   :  { %v2213_v5 = vadd.f32 %v2212_v4, %v2211_v1 }
 0x104   :  { %v1313_v6 = vadd.f32 %v2173_v3, %v1974_v41  ;;  %v1375_v7 = vadd.f32 %v2210_v0, %v1310_v2 }
 0x106   :  { %v1378_v8 = vadd.f32 %v2213_v5, %v1313_v6  ;;  %v2174_v9 = vpop.f32.mrb[8].mxu0 }
 0x107   :  { %v2175_v10 = vpop.f32.mrb[9].mxu0  ;;  %v2214_v11 = vpop.f32.mrb[8].mxu1 }
 0x108   :  { %v2176_v12 = vadd.f32 %v2175_v10, %v2174_v9  ;;  %v2177_v13 = vpop.f32.mrb[10].mxu0  ;;  %v2215_v14 = vpop.f32.mrb[9].mxu1 }
 0x109   :  { %v2178_v15 = vpop.f32.mrb[11].mxu0  ;;  %v2216_v16 = vadd.f32 %v2215_v14, %v2214_v11  ;;  %v2217_v17 = vpop.f32.mrb[10].mxu1 }
 0x10a   :  { %v1318_v18 = vadd.f32 %v2176_v12, %v1974_v41  ;;  %v2179_v19 = vadd.f32 %v2178_v15, %v2177_v13  ;;  %v2218_v20 = vpop.f32.mrb[11].mxu1 }
 0x10b   :  { %v2219_v21 = vadd.f32 %v2218_v20, %v2217_v17 }
 0x10c   :  { %v1321_v22 = vadd.f32 %v2179_v19, %v1974_v41  ;;  %v1383_v23 = vadd.f32 %v2216_v16, %v1318_v18 }
 0x10e   :  { %v1386_v24 = vadd.f32 %v2219_v21, %v1321_v22  ;;  %v2180_v25 = vpop.f32.mrb[12].mxu0 }
 0x10f   :  { %v2220_v26 = vpop.f32.mrb[12].mxu1  ;;  %v2181_v27 = vpop.f32.mrb[13].mxu0 }
 0x110   :  { %v2221_v28 = vpop.f32.mrb[13].mxu1  ;;  %v2182_v29 = vadd.f32 %v2181_v27, %v2180_v25  ;;  %v2183_v30 = vpop.f32.mrb[14].mxu0 }
 0x111   :  { %v2222_v31 = vadd.f32 %v2221_v28, %v2220_v26  ;;  %v2223_v32 = vpop.f32.mrb[14].mxu1  ;;  %v2184_v33 = vpop.f32.mrb[15].mxu0 }
 0x112   :  { %v2224_v34 = vpop.f32.mrb[15].mxu1  ;;  %v1326_v35 = vadd.f32 %v2182_v29, %v1974_v41  ;;  %v2185_v36 = vadd.f32 %v2184_v33, %v2183_v30 }
 0x113   :  { %v2225_v37 = vadd.f32 %v2224_v34, %v2223_v32 }
 0x114   :  { %v1329_v38 = vadd.f32 %v2185_v36, %v1974_v41  ;;  %v1391_v39 = vadd.f32 %v2222_v31, %v1326_v35 }
 0x116   :  { %v1394_v40 = vadd.f32 %v2225_v37, %v1329_v38  ;;  %v2242_v42 = vpop.f32.mrb[16].mxu0 }
 0x117   :  { %v2243_v43 = vpop.f32.mrb[17].mxu0  ;;  %v2282_v46 = vpop.f32.mrb[16].mxu1 }
 0x118   :  { %v2244_v44 = vadd.f32 %v2243_v43, %v2242_v42  ;;  %v2245_v45 = vpop.f32.mrb[18].mxu0  ;;  %v2283_v48 = vpop.f32.mrb[17].mxu1 }
 0x119   :  { %v2246_v47 = vpop.f32.mrb[19].mxu0  ;;  %v2284_v51 = vadd.f32 %v2283_v48, %v2282_v46  ;;  %v2285_v52 = vpop.f32.mrb[18].mxu1 }
 0x11a   :  { %v1432_v49 = vadd.f32 %v2244_v44, %v1367_v55  ;;  %v2247_v50 = vadd.f32 %v2246_v47, %v2245_v45  ;;  %v2286_v53 = vpop.f32.mrb[19].mxu1 }
 0x11b   :  { %v2287_v58 = vadd.f32 %v2286_v53, %v2285_v52 }
 0x11c   :  { %v1435_v54 = vadd.f32 %v2247_v50, %v1370_v56  ;;  %v1497_v57 = vadd.f32 %v2284_v51, %v1432_v49 }
 0x11e   :  { %v1500_v59 = vadd.f32 %v2287_v58, %v1435_v54  ;;  %v2248_v60 = vpop.f32.mrb[20].mxu0 }
 0x11f   :  { %v2249_v41 = vpop.f32.mrb[21].mxu0  ;;  %v2288_v61 = vpop.f32.mrb[20].mxu1 }
 0x120   :  { %v2250_v62 = vadd.f32 %v2249_v41, %v2248_v60  ;;  %v2251_v63 = vpop.f32.mrb[22].mxu0  ;;  %v2289_v0 = vpop.f32.mrb[21].mxu1 }
 0x121   :  { %v2252_v1 = vpop.f32.mrb[23].mxu0  ;;  %v2290_v2 = vadd.f32 %v2289_v0, %v2288_v61  ;;  %v2291_v3 = vpop.f32.mrb[22].mxu1 }
 0x122   :  { %v1440_v4 = vadd.f32 %v2250_v62, %v1375_v7  ;;  %v2253_v5 = vadd.f32 %v2252_v1, %v2251_v63  ;;  %v2292_v55 = vpop.f32.mrb[23].mxu1 }
 0x123   :  { %v2293_v6 = vadd.f32 %v2292_v55, %v2291_v3 }
 0x124   :  { %v1443_v9 = vadd.f32 %v2253_v5, %v1378_v8  ;;  %v1505_v10 = vadd.f32 %v2290_v2, %v1440_v4 }
 0x126   :  { %v1508_v11 = vadd.f32 %v2293_v6, %v1443_v9  ;;  %v2254_v56 = vpop.f32.mrb[24].mxu0 }
 0x127   :  { %v2294_v12 = vpop.f32.mrb[24].mxu1  ;;  %v2255_v13 = vpop.f32.mrb[25].mxu0 }
 0x128   :  { %v2295_v14 = vpop.f32.mrb[25].mxu1  ;;  %v2256_v15 = vadd.f32 %v2255_v13, %v2254_v56  ;;  %v2257_v16 = vpop.f32.mrb[26].mxu0 }
 0x129   :  { %v2296_v17 = vadd.f32 %v2295_v14, %v2294_v12  ;;  %v2297_v18 = vpop.f32.mrb[26].mxu1  ;;  %v2258_v19 = vpop.f32.mrb[27].mxu0 }
 0x12a   :  { %v2298_v20 = vpop.f32.mrb[27].mxu1  ;;  %v1448_v21 = vadd.f32 %v2256_v15, %v1383_v23  ;;  %v2259_v22 = vadd.f32 %v2258_v19, %v2257_v16 }
 0x12b   :  { %v2299_v25 = vadd.f32 %v2298_v20, %v2297_v18 }
 0x12c   :  { %v1451_v7 = vadd.f32 %v2259_v22, %v1386_v24  ;;  %v1513_v26 = vadd.f32 %v2296_v17, %v1448_v21 }
 0x12e   :  { %v1516_v27 = vadd.f32 %v2299_v25, %v1451_v7  ;;  %v2260_v28 = vpop.f32.mrb[28].mxu0 }
 0x12f   :  { %v2261_v8 = vpop.f32.mrb[29].mxu0  ;;  %v2300_v29 = vpop.f32.mrb[28].mxu1 }
 0x130   :  { %v2262_v30 = vadd.f32 %v2261_v8, %v2260_v28  ;;  %v2263_v31 = vpop.f32.mrb[30].mxu0  ;;  %v2301_v32 = vpop.f32.mrb[29].mxu1 }
 0x131   :  { %v2264_v33 = vpop.f32.mrb[31].mxu0  ;;  %v2302_v34 = vadd.f32 %v2301_v32, %v2300_v29  ;;  %v2303_v35 = vpop.f32.mrb[30].mxu1 }
 0x132   :  { %v1456_v36 = vadd.f32 %v2262_v30, %v1391_v39  ;;  %v2265_v37 = vadd.f32 %v2264_v33, %v2263_v31  ;;  %v2304_v38 = vpop.f32.mrb[31].mxu1 }
 0x133   :  { %v2305_v42 = vadd.f32 %v2304_v38, %v2303_v35 }
 0x134   :  { %v1459_v43 = vadd.f32 %v2265_v37, %v1394_v40  ;;  %v1521_v23 = vadd.f32 %v2302_v34, %v1456_v36 }
 0x136   :  { %v1524_v44 = vadd.f32 %v2305_v42, %v1459_v43  ;;  %v2322_v45 = vpop.f32.mrb[32].mxu0 }
 0x137   :  { %v2323_v24 = vpop.f32.mrb[33].mxu0  ;;  %v2362_v46 = vpop.f32.mrb[32].mxu1 }
 0x138   :  { %v2324_v47 = vadd.f32 %v2323_v24, %v2322_v45  ;;  %v2325_v48 = vpop.f32.mrb[34].mxu0  ;;  %v2363_v49 = vpop.f32.mrb[33].mxu1 }
 0x139   :  { %v2326_v50 = vpop.f32.mrb[35].mxu0  ;;  %v2364_v51 = vadd.f32 %v2363_v49, %v2362_v46  ;;  %v2365_v52 = vpop.f32.mrb[34].mxu1 }
 0x13a   :  { %v1562_v53 = vadd.f32 %v2324_v47, %v1497_v57  ;;  %v2327_v54 = vadd.f32 %v2326_v50, %v2325_v48  ;;  %v2366_v58 = vpop.f32.mrb[35].mxu1 }
 0x13b   :  { %v2367_v60 = vadd.f32 %v2366_v58, %v2365_v52 }
 0x13c   :  { %v1565_v39 = vadd.f32 %v2327_v54, %v1500_v59  ;;  %v1627_v41 = vadd.f32 %v2364_v51, %v1562_v53 }
 0x13e   :  { %v3203_v61 = vadd.f32 %v2367_v60, %v1565_v39  ;;  %v2328_v40 = vpop.f32.mrb[36].mxu0 }
 0x13f   :  { %v2329_v62 = vpop.f32.mrb[37].mxu0  ;;  %v2368_v63 = vpop.f32.mrb[36].mxu1 }
 0x140   :  { %v2330_v0 = vadd.f32 %v2329_v62, %v2328_v40  ;;  %v2331_v1 = vpop.f32.mrb[38].mxu0  ;;  %v2369_v2 = vpop.f32.mrb[37].mxu1 }
 0x141   :  { %v2332_v3 = vpop.f32.mrb[39].mxu0  ;;  %v2370_v4 = vadd.f32 %v2369_v2, %v2368_v63  ;;  %v2371_v5 = vpop.f32.mrb[38].mxu1 }
 0x142   :  { %v1570_v55 = vadd.f32 %v2330_v0, %v1505_v10  ;;  %v2333_v6 = vadd.f32 %v2332_v3, %v2331_v1  ;;  %v2372_v9 = vpop.f32.mrb[39].mxu1 }
 0x143   :  { %v2373_v57 = vadd.f32 %v2372_v9, %v2371_v5 }
 0x144   :  { %v1573_v56 = vadd.f32 %v2333_v6, %v1508_v11  ;;  %v3205_v12 = vadd.f32 %v2370_v4, %v1570_v55 }
 0x146   :  { %v3207_v59 = vadd.f32 %v2373_v57, %v1573_v56  ;;  %v2334_v13 = vpop.f32.mrb[40].mxu0 }
 0x147   :  { %v2335_v14 = vpop.f32.mrb[41].mxu0  ;;  %v2374_v15 = vpop.f32.mrb[40].mxu1 }
 0x148   :  { %v2336_v16 = vadd.f32 %v2335_v14, %v2334_v13  ;;  %v2337_v17 = vpop.f32.mrb[42].mxu0  ;;  %v2375_v18 = vpop.f32.mrb[41].mxu1 }
 0x149   :  { %v2338_v19 = vpop.f32.mrb[43].mxu0  ;;  %v2376_v20 = vadd.f32 %v2375_v18, %v2374_v15  ;;  %v2377_v21 = vpop.f32.mrb[42].mxu1 }
 0x14a   :  { %v1578_v22 = vadd.f32 %v2336_v16, %v1513_v26  ;;  %v2339_v25 = vadd.f32 %v2338_v19, %v2337_v17  ;;  %v2378_v10 = vpop.f32.mrb[43].mxu1 }
 0x14b   :  { %v2379_v7 = vadd.f32 %v2378_v10, %v2377_v21 }
 0x14c   :  { %v1581_v28 = vadd.f32 %v2339_v25, %v1516_v27  ;;  %v1643_v8 = vadd.f32 %v2376_v20, %v1578_v22 }
 0x14e   :  { %v1646_v11 = vadd.f32 %v2379_v7, %v1581_v28  ;;  %v2340_v29 = vpop.f32.mrb[44].mxu0 }
 0x14f   :  { %v2341_v30 = vpop.f32.mrb[45].mxu0  ;;  %v2380_v31 = vpop.f32.mrb[44].mxu1 }
 0x150   :  { %v2342_v32 = vadd.f32 %v2341_v30, %v2340_v29  ;;  %v2343_v33 = vpop.f32.mrb[46].mxu0  ;;  %v2381_v34 = vpop.f32.mrb[45].mxu1 }
 0x151   :  { %v2344_v35 = vpop.f32.mrb[47].mxu0  ;;  %v2382_v36 = vadd.f32 %v2381_v34, %v2380_v31  ;;  %v2383_v37 = vpop.f32.mrb[46].mxu1 }
 0x152   :  { %v1586_v38 = vadd.f32 %v2342_v32, %v1521_v23  ;;  %v2345_v42 = vadd.f32 %v2344_v35, %v2343_v33  ;;  %v2384_v43 = vpop.f32.mrb[47].mxu1  ;;  %v2654_v32 = vmov 0.0  }
 0x153   :  { %v2385_v45 = vadd.f32 %v2384_v43, %v2383_v37  ;;  %2430 = vmatprep.subr.mxu1 %v2654_v32  ;;  %2432 = vmatprep.mubr.msk.f32.mxu1 %vm2655_vm0, %v2654_v32 }
 0x154   :  { %v1589_v26 = vadd.f32 %v2345_v42, %v1524_v44  ;;  %v1651_v24 = vadd.f32 %v2382_v36, %v1586_v38  ;;  %v2143_v44 = vld [vmem:[%s3232_s3] ss:$0 sm:$0xff] }
 0x156   :  { %v1654_v46 = vadd.f32 %v2385_v45, %v1589_v26  ;;  %v2402_v47 = vpop.f32.mrb[48].mxu0 }
 0x157   :  { %v2420_v27 = vpop.f32.mrb[48].mxu1  ;;  %v2403_v48 = vpop.f32.mrb[49].mxu0 }
 0x158   :  { %v2404_v49 = vadd.f32 %v2403_v48, %v2402_v47  ;;  %v2421_v50 = vpop.f32.mrb[49].mxu1  ;;  %v2405_v51 = vpop.f32.mrb[50].mxu0 }
 0x159   :  { %v2422_v52 = vadd.f32 %v2421_v50, %v2420_v27  ;;  %v2423_v53 = vpop.f32.mrb[50].mxu1  ;;  %v2406_v54 = vpop.f32.mrb[51].mxu0 }
 0x15a   :  { %v2407_v58 = vadd.f32 %v2406_v54, %v2405_v51  ;;  %v2424_v60 = vpop.f32.mrb[51].mxu1  ;;  %v1692_v39 = vadd.f32 %v2404_v49, %v1627_v41 }
 0x15b   :  { %v1716_v40 = vadd.f32 %v2422_v52, %v1651_v24  ;;  %v2425_v23 = vadd.f32 %v2424_v60, %v2423_v53 }
 0x15c   :  { %v1695_v62 = vadd.f32 %v2407_v58, %v3203_v61  ;;  %v1722_v63 = vmax.f32 %v1692_v39, 0.0 }
 0x15d   :  { %v1719_v0 = vadd.f32 %v2425_v23, %v1654_v46  ;;  %v1728_v7 = vmax.f32 %v1716_v40, 0.0 }
 0x15e   :  { %v1723_v1 = vmax.f32 %v1695_v62, 0.0  ;;  %v2408_v2 = vpop.f32.mrb[52].mxu0  ;;  %v1737_v3 = vmul.f32 %v2143_v44, %v1722_v63 }
 0x15f   :  { %v2409_v4 = vpop.f32.mrb[53].mxu0  ;;  %v1743_v30 = vmul.f32 %v2143_v44, %v1728_v7 }
 0x160   :  { %v2410_v5 = vadd.f32 %v2409_v4, %v2408_v2  ;;  %v2411_v55 = vpop.f32.mrb[54].mxu0  ;;  %1745 = vadd.xlane.f32.xlu0 %v1737_v3  ;;  %v1738_v41 = vmul.f32 %v2143_v44, %v1723_v1 }
 0x161   :  { %v2412_v6 = vpop.f32.mrb[55].mxu0 }
 0x162   :  { %v2413_v9 = vadd.f32 %v2412_v6, %v2411_v55  ;;  %v1700_v57 = vadd.f32 %v2410_v5, %v3205_v12 }
 0x164   :  { %v1703_v56 = vadd.f32 %v2413_v9, %v3207_v59  ;;  %1747 = vadd.xlane.f32.xlu0 %v1738_v41  ;;  %v1724_v13 = vmax.f32 %v1700_v57, 0.0  ;;  %v1729_v59 = vmax.f32 %v1719_v0, 0.0  ;;  %v1893_v0 = vstv %s3235_s6 }
 0x166   :  { %v1725_v14 = vmax.f32 %v1703_v56, 0.0  ;;  %v2414_v61 = vpop.f32.mrb[56].mxu0  ;;  %v1739_v15 = vmul.f32 %v2143_v44, %v1724_v13  ;;  %v1744_v31 = vmul.f32 %v2143_v44, %v1729_v59 }
 0x167   :  { %v2415_v16 = vpop.f32.mrb[57].mxu0 }
 0x168   :  { %v2416_v17 = vadd.f32 %v2415_v16, %v2414_v61  ;;  %v2417_v18 = vpop.f32.mrb[58].mxu0  ;;  %1749 = vadd.xlane.f32.xlu1 %v1739_v15  ;;  %v1740_v22 = vmul.f32 %v2143_v44, %v1725_v14 }
 0x169   :  { %v2418_v19 = vpop.f32.mrb[59].mxu0 }
 0x16a   :  { %v1708_v20 = vadd.f32 %v2416_v17, %v1643_v8  ;;  %v2419_v21 = vadd.f32 %v2418_v19, %v2417_v18  ;;  %v1762_v8 = vld [vmem:[%s3233_s5] sm:$0xff] }
 0x16b   :  { %2431 = vmatpush3.msra.mxu1 %v1762_v8 }
 0x16c   :  { %v1726_v25 = vmax.f32 %v1708_v20, 0.0  ;;  %v1711_v10 = vadd.f32 %v2419_v21, %v1646_v11  ;;  %1751 = vadd.xlane.f32.xlu1 %v1740_v22  ;;  %2435 = vmatprep.subr.mxu1 %v2654_v32  ;;  %v1771_v11 = vlaneseq }
 0x16e   :  { %v1727_v12 = vmax.f32 %v1711_v10, 0.0  ;;  %v1741_v28 = vmul.f32 %v2143_v44, %v1726_v25  ;;  %v1772_v34 = vand.u32 127, %v1771_v11  ;;  %v1774_v35 = vshrl.u32 %v1771_v11, 7 }
 0x170   :  { %1753 = vadd.xlane.f32.xlu0 %v1741_v28  ;;  %v1742_v29 = vmul.f32 %v2143_v44, %v1727_v12  ;;  %v1775_v38 = vsub.s32 %v1772_v34, %v1774_v35  ;;  %v1761_v44 = vld [vmem:[%s3234_s4] sm:$0x3f] }
 0x172   :  { %1755 = vadd.xlane.f32.xlu1 %v1742_v29 }
 0x174   :  { %1757 = vadd.xlane.f32.xlu0 %v1743_v30 }
 0x176   :  { %1759 = vadd.xlane.f32.xlu1 %v1744_v31 }
 0x1ed   :  { %v1746_v33 = vpop.xlane.xlu0 %1745 }
 0x1ee   :  { %v1776_v26 = vrot.slane %v1746_v33, %v1775_v38 }
 0x1f1   :  { %v1748_v37 = vpop.xlane.xlu0 %1747 }
 0x1f2   :  { %v1780_v42 = vrot.slane %v1748_v37, %v1775_v38 }
 0x1f4   :  { %v1806_v46 = vsel %vm1805_vm1, %v1780_v42, %v1776_v26 }
 0x1f5   :  { %v1750_v36 = vpop.xlane.xlu1 %1749 }
 0x1f6   :  { %v1784_v45 = vrot.slane %v1750_v36, %v1775_v38 }
 0x1f8   :  { %v1808_v27 = vsel %vm1807_vm2, %v1784_v45, %v1806_v46 }
 0x1f9   :  { %v1752_v43 = vpop.xlane.xlu1 %1751 }
 0x1fa   :  { %v1788_v24 = vrot.slane %v1752_v43, %v1775_v38 }
 0x1fc   :  { %v1810_v49 = vsel %vm1809_vm3, %v1788_v24, %v1808_v27 }
 0x1fd   :  { %v1754_v47 = vpop.xlane.xlu0 %1753 }
 0x1fe   :  { %v1792_v48 = vrot.slane %v1754_v47, %v1775_v38 }
 0x1ff   :  { %v1756_v50 = vpop.xlane.xlu1 %1755 }
 0x200   :  { %v1812_v51 = vsel %vm1811_vm4, %v1792_v48, %v1810_v49  ;;  %v1796_v52 = vrot.slane %v1756_v50, %v1775_v38 }
 0x201   :  { %v1758_v53 = vpop.xlane.xlu0 %1757 }
 0x202   :  { %v1814_v54 = vsel %vm1813_vm5, %v1796_v52, %v1812_v51  ;;  %v1800_v58 = vrot.slane %v1758_v53, %v1775_v38 }
 0x203   :  { %v1760_v60 = vpop.xlane.xlu1 %1759 }
 0x204   :  { %v1816_v39 = vsel %vm1815_vm6, %v1800_v58, %v1814_v54  ;;  %v1804_v40 = vrot.slane %v1760_v60, %v1775_v38 }
 0x206   :  { %v1818_v23 = vsel %vm1817_vm7, %v1804_v40, %v1816_v39 }
 0x207   :  { %2433 = vmatmul.mubr.msk.f32.vlgmr.msra.gmra.mrb[52].mxu1 %vm1819_vm8, %v1818_v23 }
 0x208   :  { %2437 = vmatprep.mubr.msk.f32.mxu1 %vm2655_vm0, %v2654_v32 }
 0x2da   :  { %v1888_v62 = vpop.f32.mrb[52].mxu1 }
 0x2db   :  { %v2434_v63 = vpop.f32.mrb[53].mxu1  ;;  %2436 = vmatpush3.msra.mxu1 %v1888_v62 }
 0x2dc   :  { %2438 = vmatmul.mubr.msk.f32.vlgmr.msra.gmra.mrb[54].mxu1 %vm1819_vm8, %v1761_v44 }
 0x3af   :  { %v1963_v1 = vpop.f32.mrb[54].mxu1 }
 0x3b0   :  { %v1964_v2 = vadd.f32 %v1963_v1, %v1893_v0  ;;  %v2439_v3 = vpop.f32.mrb[55].mxu1 }
 0x3b2   :  { %v1967_v4 = vmax.f32 %v1964_v2, 0.0 }
 0x3b4   :  { %1969 = vst.msk [vmem:[%s3236_s7] sm:$0x3f] %vm1968_vm9, %v1967_v4 }

</bundles_post_ra>
